<compile_context>
chip_gen: v5e
topology: v5e:2x2
jax: 0.10.0
libtpu: 0.0.40
codegen_flags: <defaults>
</compile_context>

<pallas_src>
import functools

import jax
import jax.numpy as jnp
from jax.experimental import pallas as pl
from jax.experimental.pallas import tpu as pltpu


def _fused_linear_kernel(x_ref, w_ref, b_ref, out_ref):
    # x_ref  : (TILE_B, K)      current batch tile, K = T*N
    # w_ref  : (K, C_pad)       fused weights (resident across the grid)
    # b_ref  : (1, C_pad)       fused bias
    # out_ref: (TILE_B, C_pad)
    out_ref[...] = (
        jnp.dot(x_ref[...], w_ref[...], preferred_element_type=jnp.float32)
        + b_ref[...]
    ).astype(out_ref.dtype)


def _choose_tile_b(batch: int, k: int, dtype_bytes: int = 4,
                   vmem_budget_bytes: int = 24 * 1024 * 1024,
                   max_tile: int = 1024) -> int:
    """Pick a batch tile: big enough to amortize grid overhead, small enough that
    the double-buffered input tile fits comfortably in scoped VMEM (v7x-safe)."""
    cap = max(8, vmem_budget_bytes // (2 * k * dtype_bytes))
    tile = min(max_tile, cap)
    tile = max(8, (tile // 8) * 8)        # sublane-aligned
    if batch <= tile:
        return batch                      # single block covering the full batch
    return tile


@functools.partial(jax.jit, static_argnames=())
def linear_baseline_forward(inputs_embeds, w1, b1, w2, b2):
    """inputs_embeds: (B, T, N); w1: (1, T); b1: (1,); w2: (C, N); b2: (C,)."""
    B, T, N = inputs_embeds.shape
    C = w2.shape[0]
    K = T * N

    # --- fuse the two linears in the wrapper (exact, see header math) ---------
    w1_f = w1.reshape(T).astype(jnp.float32)                     # (T,)
    w2t = jnp.transpose(w2).astype(jnp.float32)                  # (N, C)
    w_eff = (w1_f[:, None, None] * w2t[None, :, :]).reshape(K, C)  # (T*N, C)
    b_eff = b1.reshape(())[()].astype(jnp.float32) * jnp.sum(w2t, axis=0) \
        + b2.astype(jnp.float32)                                 # (C,)

    # --- lane-dense output: pad the class dim to a multiple of 128 ------------
    C_pad = pl.cdiv(C, 128) * 128
    if C_pad != C:
        w_eff = jnp.pad(w_eff, ((0, 0), (0, C_pad - C)))
        b_eff = jnp.pad(b_eff, (0, C_pad - C))
    b_eff = b_eff.reshape(1, C_pad)

    # --- batch tiling ----------------------------------------------------------
    x2d = inputs_embeds.reshape(B, K).astype(jnp.float32)        # contiguous reshape
    tile_b = _choose_tile_b(B, K)
    B_pad = pl.cdiv(B, tile_b) * tile_b
    if B_pad != B:
        x2d = jnp.pad(x2d, ((0, B_pad - B), (0, 0)))
    grid_b = B_pad // tile_b

    out = pl.pallas_call(
        _fused_linear_kernel,
        out_shape=jax.ShapeDtypeStruct((B_pad, C_pad), inputs_embeds.dtype),
        grid_spec=pltpu.PrefetchScalarGridSpec(
            num_scalar_prefetch=0,
            grid=(grid_b,),
            in_specs=[
                pl.BlockSpec((tile_b, K), lambda i: (i, 0)),      # x batch tile
                pl.BlockSpec((K, C_pad), lambda i: (0, 0)),       # fused weight
                pl.BlockSpec((1, C_pad), lambda i: (0, 0)),       # fused bias
            ],
            out_specs=pl.BlockSpec((tile_b, C_pad), lambda i: (i, 0)),
        ),
        compiler_params=pltpu.CompilerParams(
            dimension_semantics=("parallel",),
            vmem_limit_bytes=32 * 1024 * 1024,
        ),
    )(x2d, w_eff, b_eff)

    return out[:B, :C]


if __name__ == "__main__":
    # Small shapes consistent with the module: B batch, T timesteps, N networks, C classes.
    B, T, N, C = 2, 8, 32, 4

    key = jax.random.PRNGKey(0)
    k_x, k_w1, k_b1, k_w2, k_b2 = jax.random.split(key, 5)

    # Deterministic parameter init (shapes match nn.Linear(T,1) and nn.Linear(N,C)).
    x = jax.random.normal(k_x, (B, T, N), dtype=jnp.float32)        # inputs_embeds
    w1 = jax.random.normal(k_w1, (1, T), dtype=jnp.float32) * (1.0 / T) ** 0.5
    b1 = jax.random.normal(k_b1, (1,), dtype=jnp.float32) * 0.01
    w2 = jax.random.normal(k_w2, (C, N), dtype=jnp.float32) * (1.0 / N) ** 0.5
    b2 = jax.random.normal(k_b2, (C,), dtype=jnp.float32) * 0.01

    logits = linear_baseline_forward(x, w1, b1, w2, b2)
    logits = jax.block_until_ready(logits)

    # Pure-JAX reference of the PyTorch forward.
    y_ref = jnp.einsum("btn,t->bn", x, w1[0]) + b1[0]               # (B, N)
    logits_ref = y_ref @ w2.T + b2                                  # (B, C)

    assert logits.shape == (B, C)
    assert jnp.allclose(logits, logits_ref, atol=1e-5, rtol=1e-5), (
        "Pallas output mismatch vs reference")

    print("KERNEL_OK")
</pallas_src>

<mosaic_0001>
module attributes {stable_mosaic.version = 11 : i64} {
  func.func @_fused_linear_kernel(%arg0: i32, %arg1: memref<2x256xf32, #tpu.memory_space<vmem>>, %arg2: memref<256x128xf32, #tpu.memory_space<vmem>>, %arg3: memref<1x128xf32, #tpu.memory_space<vmem>>, %arg4: memref<2x128xf32, #tpu.memory_space<vmem>>) attributes {dimension_semantics = [#tpu.dimension_semantics<parallel>], iteration_bounds = array<i64: 1>, scalar_prefetch = 0 : i64, scratch_operands = 0 : i64, tpu.core_type = #tpu.core_type<tc>, window_params = [{transform_indices = @transform_0, window_bounds = array<i64: 2, 256>}, {pipeline_mode = #tpu.pipeline_mode<synchronous>, transform_indices = @transform_1, window_bounds = array<i64: 256, 128>}, {pipeline_mode = #tpu.pipeline_mode<synchronous>, transform_indices = @transform_2, window_bounds = array<i64: 1, 128>}, {transform_indices = @transform_3, window_bounds = array<i64: 2, 128>}]} {
    %c0 = arith.constant 0 : index
    %c0_0 = arith.constant 0 : index
    %0 = vector.load %arg1[%c0, %c0_0] : memref<2x256xf32, #tpu.memory_space<vmem>>, vector<2x256xf32>
    %c0_1 = arith.constant 0 : index
    %c0_2 = arith.constant 0 : index
    %1 = vector.load %arg2[%c0_1, %c0_2] : memref<256x128xf32, #tpu.memory_space<vmem>>, vector<256x128xf32>
    %cst = arith.constant dense<0.000000e+00> : vector<2x128xf32>
    %2 = tpu.matmul %0, %1, %cst {dimension_numbers = #tpu.dot_dimension_numbers<[1], [0], [0], [1], [0, 0, 1, 1], [], []>} : vector<2x256xf32>, vector<256x128xf32>, vector<2x128xf32> -> vector<2x128xf32>
    %c0_3 = arith.constant 0 : index
    %c0_4 = arith.constant 0 : index
    %3 = vector.load %arg3[%c0_3, %c0_4] : memref<1x128xf32, #tpu.memory_space<vmem>>, vector<1x128xf32>
    %4 = vector.broadcast %3 : vector<1x128xf32> to vector<2x128xf32>
    %5 = arith.addf %2, %4 : vector<2x128xf32>
    %c0_5 = arith.constant 0 : index
    %c0_6 = arith.constant 0 : index
    %6 = vector.load %arg4[%c0_5, %c0_6] : memref<2x128xf32, #tpu.memory_space<vmem>>, vector<2x128xf32>
    tpu.vector_store %arg4[%c0_5, %c0_6], %5 {strides = array<i32>} : memref<2x128xf32, #tpu.memory_space<vmem>>, vector<2x128xf32>,
    return
  }
  func.func @transform_0(%arg0: i32) -> (i32, i32) {
    %c0_i32 = arith.constant 0 : i32
    %c0_i32_0 = arith.constant 0 : i32
    return %arg0, %c0_i32 : i32, i32
  }
  func.func @transform_1(%arg0: i32) -> (i32, i32) {
    %c0_i32 = arith.constant 0 : i32
    %c0_i32_0 = arith.constant 0 : i32
    %c0_i32_1 = arith.constant 0 : i32
    return %c0_i32, %c0_i32_0 : i32, i32
  }
  func.func @transform_2(%arg0: i32) -> (i32, i32) {
    %c0_i32 = arith.constant 0 : i32
    %c0_i32_0 = arith.constant 0 : i32
    %c0_i32_1 = arith.constant 0 : i32
    return %c0_i32, %c0_i32_0 : i32, i32
  }
  func.func @transform_3(%arg0: i32) -> (i32, i32) {
    %c0_i32 = arith.constant 0 : i32
    %c0_i32_0 = arith.constant 0 : i32
    return %arg0, %c0_i32 : i32, i32
  }
}

</mosaic_0001>

<bundles_post_ra>
// kernel: linear_baseline_forward.1
= control target key start
LH: loop header
LB: loop body
LE: loop exit
PB: predicated region body
PF: predicated region fallthrough
CT: control target
= control target key end

     0   :  { %s269_s0 = inlined_call_operand.vmem [shape: f32[2,256], index: 0, kind: input, shape index: {}]   ;;  %s270_s1 = inlined_call_operand.vmem [shape: f32[256,128], index: 1, kind: input, shape index: {}]   ;;  %s271_s2 = inlined_call_operand.vmem [shape: f32[1,128], index: 2, kind: input, shape index: {}]   ;;  %s272_s3 = inlined_call_operand.hbm [shape: f32[2,128], index: 3, kind: output, shape index: {}]  }
   0x1   :  { %v31_v0 = vld [vmem:[%s270_s1 + $0x78] sm:$0xff]  ;;  %v30_v1 = vld [vmem:[%s270_s1 + $0x70] sm:$0xff]  ;;  %v29_v4 = vld [vmem:[%s270_s1 + $0x68] sm:$0xff] }
   0x2   :  { %v47_v2 = vld [vmem:[%s270_s1 + $0xf8] sm:$0xff]  ;;  %58 = vmatpush.msra.mxu0 %v31_v0  ;;  %v46_v3 = vld [vmem:[%s270_s1 + $0xf0] sm:$0xff]  ;;  %v45_v5 = vld [vmem:[%s270_s1 + $0xe8] sm:$0xff] }
   0x3   :  { %78 = vmatpush.msra.mxu1 %v47_v2  ;;  %v28_v6 = vld [vmem:[%s270_s1 + $0x60] sm:$0xff]  ;;  %v27_v8 = vld [vmem:[%s270_s1 + $0x58] sm:$0xff]  ;;  %v26_v10 = vld [vmem:[%s270_s1 + $0x50] sm:$0xff] }
   0x4   :  { %59 = vmatpush.msra.mxu0 %v30_v1  ;;  %v44_v7 = vld [vmem:[%s270_s1 + $0xe0] sm:$0xff]  ;;  %v43_v9 = vld [vmem:[%s270_s1 + $0xd8] sm:$0xff]  ;;  %v42_v11 = vld [vmem:[%s270_s1 + $0xd0] sm:$0xff] }
   0x5   :  { %79 = vmatpush.msra.mxu1 %v46_v3  ;;  %v25_v12 = vld [vmem:[%s270_s1 + $0x48] sm:$0xff]  ;;  %v15_v14 = vld [vmem:[%s269_s0] sm:$0xf] }
   0x6   :  { %60 = vmatpush.msra.mxu0 %v29_v4  ;;  %v41_v13 = vld [vmem:[%s270_s1 + $0xc8] sm:$0xff]  ;;  %53 = vst [vmem:[#allocation1] ss:$4 sm:$0xff] %v15_v14  ;;  %v24_v15 = vld [vmem:[%s270_s1 + $0x40] sm:$0xff] }
   0x7   :  { %80 = vmatpush.msra.mxu1 %v45_v5  ;;  %v40_v16 = vld [vmem:[%s270_s1 + $0xc0] sm:$0xff] }
   0x8   :  { %61 = vmatpush.msra.mxu0 %v28_v6 }
   0x9   :  { %81 = vmatpush.msra.mxu1 %v44_v7 }
   0xa   :  { %62 = vmatpush.msra.mxu0 %v27_v8 }
   0xb   :  { %82 = vmatpush.msra.mxu1 %v43_v9 }
   0xc   :  { %63 = vmatpush.msra.mxu0 %v26_v10 }
   0xd   :  { %83 = vmatpush.msra.mxu1 %v42_v11 }
   0xe   :  { %8 = vsyncpa [#allocation3], 0  ;;  %64 = vmatpush.msra.mxu0 %v25_v12  ;;  %v23_v17 = vld [vmem:[%s270_s1 + $0x38] sm:$0xff]  ;;  %v22_v19 = vld [vmem:[%s270_s1 + $0x30] sm:$0xff]  ;;  %s143_s24 = smov [#allocation2]  }
   0xf   :  { %84 = vmatpush.msra.mxu1 %v41_v13  ;;  %v39_v18 = vld [vmem:[%s270_s1 + $0xb8] sm:$0xff]  ;;  %v38_v20 = vld [vmem:[%s270_s1 + $0xb0] sm:$0xff]  ;;  %v21_v21 = vld [vmem:[%s270_s1 + $0x28] sm:$0xff]  ;;  %s104_s25 = sshll.u32 %s143_s24, 4  ;;  %s105_s25 = int_to_ptr.vmem [resolvable:$true] %s104_s25 }
  0x10   :  { %65 = vmatpush.msra.mxu0 %v24_v15  ;;  %v37_v22 = vld [vmem:[%s270_s1 + $0xa8] sm:$0xff]  ;;  %v20_v23 = vld [vmem:[%s270_s1 + $0x20] sm:$0xff]  ;;  %v19_v25 = vld [vmem:[%s270_s1 + $0x18] sm:$0xff] }
  0x11   :  { %85 = vmatpush.msra.mxu1 %v40_v16  ;;  %v36_v24 = vld [vmem:[%s270_s1 + $0xa0] sm:$0xff]  ;;  %v35_v26 = vld [vmem:[%s270_s1 + $0x98] sm:$0xff]  ;;  %v18_v27 = vld [vmem:[%s270_s1 + $0x10] sm:$0xff] }
  0x12   :  { %66 = vmatpush.msra.mxu0 %v23_v17  ;;  %v34_v28 = vld [vmem:[%s270_s1 + $0x90] sm:$0xff]  ;;  %v17_v29 = vld [vmem:[%s270_s1 + $0x8] sm:$0xff]  ;;  %v16_v31 = vld [vmem:[%s270_s1] sm:$0xff] }
  0x13   :  { %86 = vmatpush.msra.mxu1 %v39_v18  ;;  %v33_v30 = vld [vmem:[%s270_s1 + $0x88] sm:$0xff]  ;;  %v32_v32 = vld [vmem:[%s270_s1 + $0x80] sm:$0xff]  ;;  %s106_s1 = sshll.u32 %s272_s3, 4  ;;  %s107_s1 = int_to_ptr.hbm [resolvable:$true] %s106_s1 }
  0x14   :  { %67 = vmatpush.msra.mxu0 %v22_v19  ;;  %v54_v33 = vld.sshfl [vmem:[#allocation1] sm:$0xff pattern:$0x73625140]  ;;  %v55_v34 = vld.sshfl [vmem:[#allocation1 + $0x8] sm:$0xff pattern:$0x73625140] }
  0x15   :  { %87 = vmatpush.msra.mxu1 %v38_v20  ;;  %v116_v35 = vld [vmem:[%s271_s2] ss:$0 sm:$0xff] }
  0x16   :  { %68 = vmatpush.msra.mxu0 %v21_v21 }
  0x17   :  { %88 = vmatpush.msra.mxu1 %v37_v22 }
  0x18   :  { %69 = vmatpush.msra.mxu0 %v20_v23 }
  0x19   :  { %89 = vmatpush.msra.mxu1 %v36_v24 }
  0x1a   :  { %70 = vmatpush.msra.mxu0 %v19_v25 }
  0x1b   :  { %90 = vmatpush.msra.mxu1 %v35_v26 }
  0x1c   :  { %71 = vmatpush.msra.mxu0 %v18_v27 }
  0x1d   :  { %91 = vmatpush.msra.mxu1 %v34_v28 }
  0x1e   :  { %72 = vmatpush.msra.mxu0 %v17_v29 }
  0x1f   :  { %92 = vmatpush.msra.mxu1 %v33_v30 }
  0x20   :  { %73 = vmatpush.msra.mxu0 %v16_v31 }
  0x21   :  { %93 = vmatpush.msra.mxu1 %v32_v32  ;;  %74 = vmatmul.f32.vlgmr.msra.gmra.mxu0 %v54_v33 }
  0x22   :  { %94 = vmatmul.f32.vlgmr.msra.gmra.mxu1 %v55_v34 }
  0x9e   :  { %v75_v36 = vpop.f32.mrf.mxu0 }
  0x9f   :  { %v95_v37 = vpop.f32.mrf.mxu1  ;;  %v76_v38 = vadd.f32 %v116_v35, %v75_v36 }
  0xa1   :  { %v96_v39 = vadd.f32 %v95_v37, %v76_v38 }
  0xa3   :  { %98 = vst [vmem:[#allocation2] sm:$0x3] %v96_v39 }
  0xa4   :  { %109 = dma.vmem_to_hbm [thread:$0]  %s105_s25, 32, %s107_s1, [#allocation3]  }
  0xa5   :  { %141 = dma.done.wait [#allocation3], 32  }
  0xa6   :  { %142 = vsyncadd [#allocation3], 4294967264 }
  0xa7   :  { %114 = vsyncpa [#allocation3], 1 }

</bundles_post_ra>
